<compile_context>
chip_gen: v5e
topology: v5e:2x2
jax: 0.10.0
libtpu: 0.0.40
codegen_flags: <defaults>
</compile_context>

<pallas_src>
import jax
import jax.numpy as jnp
from jax.experimental import pallas as pl
from jax.experimental.pallas import tpu as pltpu

_LANES = 128
_SUBLANES = 8
# 1024 x 128 f32 = 512 KiB per block; 2 inputs x 2 pipeline buffers = 2 MiB,
# comfortably inside the scoped VMEM budget on v5e/v6e/v7x.
_MAX_TILE_ROWS = 1024


def _sum_sq_diff_kernel(pred_ref, gt_ref, out_ref, acc_ref):
    """Accumulate (pred - gt)^2 into an (8,128) partial sum per partition."""
    s = pl.program_id(1)  # reduction axis (steps within a partition)

    @pl.when(s == 0)
    def _():
        acc_ref[...] = jnp.zeros_like(acc_ref)

    diff = pred_ref[...].astype(jnp.float32) - gt_ref[...].astype(jnp.float32)
    sq = diff * diff
    # Fold the (tm, 128) tile onto the (8, 128) accumulator with pure
    # elementwise (VPU) adds across vregs -- no per-step XLU reduction.
    acc_ref[...] += jnp.sum(sq.reshape(-1, _SUBLANES, _LANES), axis=0)

    # Write the per-partition partial exactly once (last reduction step).
    @pl.when(s == pl.num_programs(1) - 1)
    def _():
        out_ref[...] = acc_ref[...]


def _round_up(x, m):
    return ((x + m - 1) // m) * m


def rotation_mse_loss(pred_rot, gt_rot):
    """MSE(pred_rot, gt_rot) with 'mean' reduction (== torch.nn.MSELoss()).

    Accepts arbitrary-shaped equal-shape arrays (e.g. [batch, 4] quaternions
    or [batch, 6] 6d rotations). Accumulation is always in float32; returns a
    float32 scalar.
    """
    assert pred_rot.shape == gt_rot.shape, (pred_rot.shape, gt_rot.shape)

    n_elems = 1
    for d in pred_rot.shape:
        n_elems *= d

    # Lane-dense view: flatten and pad up to whole (tm, 128) blocks.
    rows_needed = -(-n_elems // _LANES)
    tm = min(_MAX_TILE_ROWS, _round_up(max(rows_needed, 1), _SUBLANES))
    n_blocks = -(-max(rows_needed, 1) // tm)
    # Shard block halves across TensorCores (megacore / v7x) when possible.
    n_parts = 2 if n_blocks >= 2 else 1
    steps = -(-n_blocks // n_parts)
    padded_rows = n_parts * steps * tm
    padded_elems = padded_rows * _LANES

    def _prep(x):
        flat = jnp.reshape(x, (-1,))
        if padded_elems != n_elems:
            flat = jnp.pad(flat, (0, padded_elems - n_elems))
        return jnp.reshape(flat, (padded_rows, _LANES))

    pred2d = _prep(pred_rot)  # keep source dtype; kernel casts to f32
    gt2d = _prep(gt_rot)

    in_map = lambda p, s: (p * steps + s, 0)

    partials = pl.pallas_call(
        _sum_sq_diff_kernel,
        out_shape=jax.ShapeDtypeStruct((n_parts * _SUBLANES, _LANES), jnp.float32),
        grid_spec=pltpu.PrefetchScalarGridSpec(
            num_scalar_prefetch=0,
            grid=(n_parts, steps),
            in_specs=[
                pl.BlockSpec((tm, _LANES), in_map),
                pl.BlockSpec((tm, _LANES), in_map),
            ],
            out_specs=pl.BlockSpec((_SUBLANES, _LANES), lambda p, s: (p, 0)),
            scratch_shapes=[pltpu.VMEM((_SUBLANES, _LANES), jnp.float32)],
        ),
        compiler_params=pltpu.CompilerParams(
            dimension_semantics=("parallel", "arbitrary"),
        ),
    )(pred2d, gt2d)

    # Tiny final reduce + mean on the host-side graph; padded zeros add 0,
    # and we divide by the ORIGINAL element count so the mean is exact.
    return jnp.sum(partials) / jnp.float32(n_elems)


class RotationLossPallas:
    """JAX/Pallas port of pycode/Comparisons/deterministic.py::Rotation_Loss."""

    def __init__(self, mode="quat"):
        if mode not in ["quat", "6d"]:
            raise ValueError("TODO")
        self.mode = mode

    def __call__(self, pred_dict, gt_dict):
        pred_rot = jnp.asarray(pred_dict["rotation"])
        gt_rot = jnp.asarray(gt_dict["rotation"])
        return rotation_mse_loss(pred_rot, gt_rot)


if __name__ == "__main__":
    key = jax.random.PRNGKey(0)
    k1, k2 = jax.random.split(key)

    # Small shapes consistent with the module: batch=16 quaternions (rot_dim=4).
    batch, rot_dim = 16, 4
    pred_rot = jax.random.normal(k1, (batch, rot_dim), dtype=jnp.float32)
    gt_rot = jax.random.normal(k2, (batch, rot_dim), dtype=jnp.float32)

    loss_fn = RotationLossPallas(mode="quat")
    loss = loss_fn({"rotation": pred_rot}, {"rotation": gt_rot})
    loss = jax.block_until_ready(loss)

    # Reference check (plain JAX mean-squared-error == nn.MSELoss 'mean').
    ref = jnp.mean((pred_rot - gt_rot) ** 2)
    assert jnp.allclose(loss, ref, rtol=1e-6, atol=1e-6), (loss, ref)

    # Also exercise a larger, non-divisible batch to hit the multi-step /
    # two-partition path with a padded tail.
    k3, k4 = jax.random.split(k1)
    big_pred = jax.random.normal(k3, (3001, 4), dtype=jnp.float32)
    big_gt = jax.random.normal(k4, (3001, 4), dtype=jnp.float32)
    big_loss = jax.block_until_ready(rotation_mse_loss(big_pred, big_gt))
    big_ref = jnp.mean((big_pred - big_gt) ** 2)
    assert jnp.allclose(big_loss, big_ref, rtol=1e-5, atol=1e-6), (big_loss, big_ref)

    # Exercise a bf16 input path (kernel accumulates in f32).
    bf_pred = big_pred.astype(jnp.bfloat16)
    bf_gt = big_gt.astype(jnp.bfloat16)
    bf_loss = jax.block_until_ready(rotation_mse_loss(bf_pred, bf_gt))
    bf_ref = jnp.mean((bf_pred.astype(jnp.float32) - bf_gt.astype(jnp.float32)) ** 2)
    assert jnp.allclose(bf_loss, bf_ref, rtol=1e-2, atol=1e-3), (bf_loss, bf_ref)

    print("KERNEL_OK")
</pallas_src>

<mosaic_0001>
module attributes {stable_mosaic.version = 11 : i64} {
  func.func @_sum_sq_diff_kernel(%arg0: i32, %arg1: i32, %arg2: memref<8x128xf32, #tpu.memory_space<vmem>>, %arg3: memref<8x128xf32, #tpu.memory_space<vmem>>, %arg4: memref<8x128xf32, #tpu.memory_space<vmem>>, %arg5: memref<8x128xf32, #tpu.memory_space<vmem>>) attributes {dimension_semantics = [#tpu.dimension_semantics<parallel>, #tpu.dimension_semantics<arbitrary>], iteration_bounds = array<i64: 1, 1>, scalar_prefetch = 0 : i64, scratch_operands = 1 : i64, tpu.core_type = #tpu.core_type<tc>, window_params = [{transform_indices = @transform_0, window_bounds = array<i64: 8, 128>}, {transform_indices = @transform_1, window_bounds = array<i64: 8, 128>}, {transform_indices = @transform_2, window_bounds = array<i64: 8, 128>}]} {
    %c0_i32 = arith.constant 0 : i32
    %0 = arith.cmpi eq, %arg1, %c0_i32 : i32
    %1 = arith.extui %0 : i1 to i32
    %c0_i32_0 = arith.constant 0 : i32
    %2 = arith.cmpi ne, %1, %c0_i32_0 : i32
    scf.if %2 {
      %cst_10 = arith.constant 0.000000e+00 : f32
      %15 = vector.broadcast %cst_10 : f32 to vector<8x128xf32>
      %c0_11 = arith.constant 0 : index
      %c0_12 = arith.constant 0 : index
      %16 = vector.load %arg5[%c0_11, %c0_12] : memref<8x128xf32, #tpu.memory_space<vmem>>, vector<8x128xf32>
      tpu.vector_store %arg5[%c0_11, %c0_12], %15 {strides = array<i32>} : memref<8x128xf32, #tpu.memory_space<vmem>>, vector<8x128xf32>,
    } else {
    }
    %c0 = arith.constant 0 : index
    %c0_1 = arith.constant 0 : index
    %3 = vector.load %arg2[%c0, %c0_1] : memref<8x128xf32, #tpu.memory_space<vmem>>, vector<8x128xf32>
    %c0_2 = arith.constant 0 : index
    %c0_3 = arith.constant 0 : index
    %4 = vector.load %arg3[%c0_2, %c0_3] : memref<8x128xf32, #tpu.memory_space<vmem>>, vector<8x128xf32>
    %5 = arith.subf %3, %4 : vector<8x128xf32>
    %6 = arith.mulf %5, %5 : vector<8x128xf32>
    %c0_4 = arith.constant 0 : index
    %c0_5 = arith.constant 0 : index
    %7 = vector.load %arg5[%c0_4, %c0_5] : memref<8x128xf32, #tpu.memory_space<vmem>>, vector<8x128xf32>
    %8 = vector.shape_cast %6 : vector<8x128xf32> to vector<1x8x128xf32>
    %cst = arith.constant dense<0.000000e+00> : vector<8x128xf32>
    %9 = vector.multi_reduction <add>, %8, %cst [0] : vector<1x8x128xf32> to vector<8x128xf32>
    %10 = arith.addf %7, %9 : vector<8x128xf32>
    %c0_6 = arith.constant 0 : index
    %c0_7 = arith.constant 0 : index
    %11 = vector.load %arg5[%c0_6, %c0_7] : memref<8x128xf32, #tpu.memory_space<vmem>>, vector<8x128xf32>
    tpu.vector_store %arg5[%c0_6, %c0_7], %10 {strides = array<i32>} : memref<8x128xf32, #tpu.memory_space<vmem>>, vector<8x128xf32>,
    %c0_i32_8 = arith.constant 0 : i32
    %12 = arith.cmpi eq, %arg1, %c0_i32_8 : i32
    %13 = arith.extui %12 : i1 to i32
    %c0_i32_9 = arith.constant 0 : i32
    %14 = arith.cmpi ne, %13, %c0_i32_9 : i32
    scf.if %14 {
      %c0_10 = arith.constant 0 : index
      %c0_11 = arith.constant 0 : index
      %15 = vector.load %arg5[%c0_10, %c0_11] : memref<8x128xf32, #tpu.memory_space<vmem>>, vector<8x128xf32>
      %c0_12 = arith.constant 0 : index
      %c0_13 = arith.constant 0 : index
      %16 = vector.load %arg4[%c0_12, %c0_13] : memref<8x128xf32, #tpu.memory_space<vmem>>, vector<8x128xf32>
      tpu.vector_store %arg4[%c0_12, %c0_13], %15 {strides = array<i32>} : memref<8x128xf32, #tpu.memory_space<vmem>>, vector<8x128xf32>,
    } else {
    }
    return
  }
  func.func @transform_0(%arg0: i32, %arg1: i32) -> (i32, i32) {
    %c1_i32 = arith.constant 1 : i32
    %0 = arith.muli %arg0, %c1_i32 : i32
    %1 = arith.addi %0, %arg1 : i32
    %c0_i32 = arith.constant 0 : i32
    %c0_i32_0 = arith.constant 0 : i32
    return %1, %c0_i32 : i32, i32
  }
  func.func @transform_1(%arg0: i32, %arg1: i32) -> (i32, i32) {
    %c1_i32 = arith.constant 1 : i32
    %0 = arith.muli %arg0, %c1_i32 : i32
    %1 = arith.addi %0, %arg1 : i32
    %c0_i32 = arith.constant 0 : i32
    %c0_i32_0 = arith.constant 0 : i32
    return %1, %c0_i32 : i32, i32
  }
  func.func @transform_2(%arg0: i32, %arg1: i32) -> (i32, i32) {
    %c0_i32 = arith.constant 0 : i32
    %c0_i32_0 = arith.constant 0 : i32
    return %arg0, %c0_i32 : i32, i32
  }
}

</mosaic_0001>

<bundles_post_ra>
// kernel: tpu_custom_call.1
= control target key start
LH: loop header
LB: loop body
LE: loop exit
PB: predicated region body
PF: predicated region fallthrough
CT: control target
= control target key end

     0   :  { %7 = vsyncpa [#allocation4], 0  ;;  %s192_s0 = inlined_call_operand.hbm [shape: f32[8,128], index: 0, kind: input, shape index: {}]   ;;  %s193_s1 = inlined_call_operand.hbm [shape: f32[8,128], index: 1, kind: input, shape index: {}]   ;;  %s194_s2 = inlined_call_operand.hbm [shape: f32[8,128], index: 2, kind: output, shape index: {}]  }
   0x1   :  { %8 = vsyncpa [#allocation7], 0 }
   0x2   :  { %9 = vsyncpa [#allocation5], 0  ;;  %s18_s11 = sshll.u32 %s192_s0, 4  ;;  %s165_s12 = smov [#allocation3]   ;;  %s19_s11 = int_to_ptr.hbm [resolvable:$true] %s18_s11 }
   0x3   :  { %s20_s13 = sshll.u32 %s165_s12, 4  ;;  %s32_s16 = sshll.u32 %s193_s1, 4  ;;  %s21_s13 = int_to_ptr.vmem [resolvable:$true] %s20_s13  ;;  %s33_s16 = int_to_ptr.hbm [resolvable:$true] %s32_s16 }
   0x4   :  { %23 = dma.hbm_to_vmem [thread:$0]  %s19_s11, 128, %s21_s13, [#allocation4]  }
   0x5   :  { %s166_s17 = smov [#allocation6]  }
   0x6   :  { %s34_s18 = sshll.u32 %s166_s17, 4  ;;  %s35_s18 = int_to_ptr.vmem [resolvable:$true] %s34_s18 }
   0x7   :  { %37 = dma.hbm_to_vmem [thread:$0]  %s33_s16, 128, %s35_s18, [#allocation7]  }
   0x8   :  { %159 = dma.done.wait [#allocation4], 128  }
   0x9   :  { %160 = vsyncadd [#allocation4], 4294967168 }
   0xa   :  { %161 = dma.done.wait [#allocation7], 128  }
   0xb   :  { %162 = vsyncadd [#allocation7], 4294967168  ;;  %v53_v0 = vld [vmem:[#allocation3] sm:$0xff]  ;;  %v54_v1 = vld [vmem:[#allocation6] sm:$0xff]  ;;  %s167_s0 = smov [#allocation8]   ;;  %s73_s22 = sshll.u32 %s194_s2, 4  ;;  %s74_s22 = int_to_ptr.hbm [resolvable:$true] %s73_s22 }
   0xc   :  { %s71_s19 = sshll.u32 %s167_s0, 4  ;;  %v55_v2 = vsub.f32 %v53_v0, %v54_v1  ;;  %s72_s19 = int_to_ptr.vmem [resolvable:$true] %s71_s19 }
   0xe   :  { %v56_v3 = vmul.f32 %v55_v2, %v55_v2 }
  0x10   :  { %65 = vst [vmem:[#allocation8] sm:$0xff] %v56_v3 }
  0x11   :  { %76 = dma.vmem_to_hbm [thread:$0]  %s72_s19, 128, %s74_s22, [#allocation5]  }
  0x12   :  { %163 = dma.done.wait [#allocation5], 128  }
  0x13   :  { %164 = vsyncadd [#allocation5], 4294967168 }
  0x14   :  { %81 = vsyncpa [#allocation4], 1 }
  0x15   :  { %82 = vsyncpa [#allocation7], 1 }
  0x16   :  { %83 = vsyncpa [#allocation5], 1 }

</bundles_post_ra>
